<compile_context>
chip_gen: v5e
topology: v5e:2x2
jax: 0.10.0
libtpu: 0.0.40
codegen_flags: <defaults>
</compile_context>

<pallas_src>
import math

import jax
import jax.numpy as jnp
from jax import lax
from jax.experimental import pallas as pl
from jax.experimental.pallas import tpu as pltpu


# clamp(p, 1e-7, 1-1e-7) expressed on -log(p):
_NLL_MIN = -math.log(1.0 - 1e-7)
_NLL_MAX = -math.log(1e-7)


# ----------------------------- Pallas kernel -------------------------------

def _make_joint_loss_kernel(num_classes: int, tile_rows: int, ignore_index: int):
    K = num_classes

    def kernel(npix_ref, cls_ref, bin_ref, tgt_ref, out_ref):
        # cls_ref: (K, tile_rows, 128)   bin_ref: (2, tile_rows, 128)
        # tgt_ref: (tile_rows, 128) i32  out_ref: (1, 1, 8, 128) f32
        tgt = tgt_ref[...]

        # ---- softmax pieces over K via an unrolled elementwise loop (VPU only) ----
        m = cls_ref[0].astype(jnp.float32)
        for k in range(1, K):
            m = jnp.maximum(m, cls_ref[k].astype(jnp.float32))

        sum_e = jnp.zeros_like(m)
        e0 = None
        # stays hugely negative for ignore / out-of-range labels -> nll clamps to max
        logit_t = jnp.full_like(m, -1e30)
        for k in range(K):
            x = cls_ref[k].astype(jnp.float32)
            ek = jnp.exp(x - m)
            if k == 0:
                e0 = ek
            sum_e = sum_e + ek
            logit_t = jnp.where(tgt == k, x, logit_t)

        # ---- binary head, divide-free: sigmoid(b) = 1/a with a = 1 + exp(-b) ----
        a0 = 1.0 + jnp.exp(-bin_ref[0].astype(jnp.float32))
        a1 = 1.0 + jnp.exp(-bin_ref[1].astype(jnp.float32))

        # p_t = e_t * a_other / D,  D = e0*a1 + (sum_e - e0)*a0,  log(e_t) = logit_t - m
        D = e0 * a1 + (sum_e - e0) * a0
        a_other = jnp.where(tgt == 0, a1, a0)
        nll = jnp.log(D) - jnp.log(a_other) - (logit_t - m)
        nll = jnp.clip(nll, _NLL_MIN, _NLL_MAX)   # == clamp(p_t, 1e-7, 1 - 1e-7)

        # ---- ignore-label + ragged-tail mask, tile-local partial sums ----
        t = pl.program_id(1)
        base = t * (tile_rows * 128)
        ridx = lax.broadcasted_iota(jnp.int32, (tile_rows, 128), 0)
        lidx = lax.broadcasted_iota(jnp.int32, (tile_rows, 128), 1)
        in_range = (base + ridx * 128 + lidx) < npix_ref[0]
        valid = in_range & (tgt != ignore_index)

        loss_partial = jnp.sum(jnp.where(valid, nll, 0.0))
        valid_partial = jnp.sum(jnp.where(valid, 1.0, 0.0))

        # lane-dense (8, 128) partial block: [0,0] = loss sum, [0,1] = valid count
        r = lax.broadcasted_iota(jnp.int32, (8, 128), 0)
        c = lax.broadcasted_iota(jnp.int32, (8, 128), 1)
        blk = (jnp.where((r == 0) & (c == 0), loss_partial, 0.0)
               + jnp.where((r == 0) & (c == 1), valid_partial, 0.0))
        out_ref[...] = blk[None, None]

    return kernel


# ------------------------------- JAX glue -----------------------------------

def joint_loss(cls_pred, binary_pred, cls_true, *, ignore_index=255, tile_px=16384):
    """JointLoss.forward. cls_pred (N,K,H,W), binary_pred (N,2,H,W), cls_true (N,H,W).

    Accepts bf16 or f32 logits (no wrapper-side upcast); labels are cast to int32.
    """
    N, K, H, W = cls_pred.shape
    Cb = binary_pred.shape[1]
    # TODO(synk): kernel assumes a 2-channel binary head (ch0 -> class 0, ch1 broadcast
    # to classes 1..K-1), which is the only shape the PyTorch slicing broadcasts for.
    assert Cb == 2, "JointLoss kernel expects a 2-channel binary_pred"

    P = H * W
    R = pl.cdiv(P, 128)          # pixel rows of width 128 (lane-packed layout)
    pad = R * 128 - P

    cls_f = cls_pred.reshape(N, K, P)          # keep input dtype (bf16 stays bf16)
    bin_f = binary_pred.reshape(N, Cb, P)
    tgt = cls_true.reshape(N, P).astype(jnp.int32)
    if pad:
        # only when H*W is not a multiple of 128; padded pixels are masked in-kernel
        cls_f = jnp.pad(cls_f, ((0, 0), (0, 0), (0, pad)))
        bin_f = jnp.pad(bin_f, ((0, 0), (0, 0), (0, pad)))
        tgt = jnp.pad(tgt, ((0, 0), (0, pad)), constant_values=ignore_index)
    cls_f = cls_f.reshape(N, K, R, 128)
    bin_f = bin_f.reshape(N, Cb, R, 128)
    tgt = tgt.reshape(N, R, 128)

    # row tile: either the full extent (legal for any R) or a multiple of 8 sublanes
    cap_rows = max(tile_px // 128, 8)
    tile_rows = R if R <= cap_rows else (cap_rows // 8) * 8
    n_tiles = pl.cdiv(R, tile_rows)

    npix = jnp.full((1,), P, dtype=jnp.int32)   # true pixel count -> SMEM scalar prefetch

    kernel = _make_joint_loss_kernel(K, tile_rows, ignore_index)

    in_itemsize = jnp.dtype(cls_pred.dtype).itemsize
    cost = pl.CostEstimate(
        flops=int(N * P * (8 * K + 24)),
        transcendentals=int(N * P * (K + 4)),
        bytes_accessed=int(N * P * ((K + Cb) * in_itemsize + 4)
                           + N * n_tiles * 8 * 128 * 4),
    )

    partials = pl.pallas_call(
        kernel,
        out_shape=jax.ShapeDtypeStruct((N, n_tiles, 8, 128), jnp.float32),
        grid_spec=pltpu.PrefetchScalarGridSpec(
            num_scalar_prefetch=1,
            grid=(N, n_tiles),
            in_specs=[
                # channel-major blocks: 128 pixels on lanes, rows on sublanes
                pl.BlockSpec((pl.Squeezed(), K, tile_rows, 128),
                             lambda n, t, npix_ref: (n, 0, t, 0)),
                pl.BlockSpec((pl.Squeezed(), Cb, tile_rows, 128),
                             lambda n, t, npix_ref: (n, 0, t, 0)),
                pl.BlockSpec((pl.Squeezed(), tile_rows, 128),
                             lambda n, t, npix_ref: (n, t, 0)),
            ],
            out_specs=pl.BlockSpec((1, 1, 8, 128),
                                   lambda n, t, npix_ref: (n, t, 0, 0)),
        ),
        compiler_params=pltpu.CompilerParams(
            dimension_semantics=("parallel", "parallel")),
        cost_estimate=cost,
    )(npix, cls_f, bin_f, tgt)

    loss_sum = jnp.sum(partials[:, :, 0, 0])
    valid_sum = jnp.sum(partials[:, :, 0, 1])
    return loss_sum / valid_sum


# ------------------- pure-JAX reference (faithful port) ---------------------

def joint_loss_ref(cls_pred, binary_pred, cls_true, *, ignore_index=255):
    N, K, H, W = cls_pred.shape
    valid = cls_true != ignore_index
    fgp = jax.nn.sigmoid(binary_pred)                      # (N,2,H,W)
    clsp = jax.nn.softmax(cls_pred, axis=1)                # (N,K,H,W)
    joint0 = fgp[:, 0:1] * clsp[:, 0:1]
    joint1 = fgp[:, 1:2] * clsp[:, 1:]
    joint = jnp.concatenate([joint0, joint1], axis=1)
    Z = jnp.sum(joint, axis=1, keepdims=True)
    p = jnp.clip(joint / Z, 1e-7, 1.0 - 1e-7)
    logp = jnp.log(p)
    safe_tgt = jnp.clip(cls_true, 0, K - 1).astype(jnp.int32)[:, None]   # (N,1,H,W)
    picked = jnp.take_along_axis(logp, safe_tgt, axis=1)[:, 0]           # (N,H,W)
    losses = jnp.where(valid, -picked, 0.0)
    return losses.sum() / valid.sum()


# ---------------------------------- main -------------------------------------

if __name__ == "__main__":
    key = jax.random.PRNGKey(0)
    k1, k2, k3 = jax.random.split(key, 3)

    N, K, H, W = 2, 4, 16, 16
    ignore_index = 255

    cls_pred = jax.random.normal(k1, (N, K, H, W), jnp.float32)
    binary_pred = jax.random.normal(k2, (N, 2, H, W), jnp.float32)
    labels = jax.random.randint(k3, (N, H, W), 0, K + 2)
    cls_true = jnp.where(labels >= K, ignore_index, labels).astype(jnp.int32)

    loss = joint_loss(cls_pred, binary_pred, cls_true, ignore_index=ignore_index)
    loss = jax.block_until_ready(loss)

    ref = joint_loss_ref(cls_pred, binary_pred, cls_true, ignore_index=ignore_index)
    ref = jax.block_until_ready(ref)

    assert jnp.isfinite(loss), loss
    assert jnp.allclose(loss, ref, rtol=1e-3, atol=1e-3), (loss, ref)
    print("KERNEL_OK")
</pallas_src>

<mosaic_0001>
module attributes {stable_mosaic.version = 11 : i64} {
  func.func @kernel(%arg0: i32, %arg1: i32, %arg2: memref<1xi32, #tpu.memory_space<smem>>, %arg3: memref<1x4x2x128xf32, #tpu.memory_space<vmem>>, %arg4: memref<1x2x2x128xf32, #tpu.memory_space<vmem>>, %arg5: memref<1x2x128xi32, #tpu.memory_space<vmem>>, %arg6: memref<1x1x8x128xf32, #tpu.memory_space<vmem>>) attributes {dimension_semantics = [#tpu.dimension_semantics<parallel>, #tpu.dimension_semantics<parallel>], iteration_bounds = array<i64: 2, 1>, scalar_prefetch = 1 : i64, scratch_operands = 0 : i64, tpu.core_type = #tpu.core_type<tc>, window_params = [{transform_indices = @transform_0, window_bounds = array<i64: 1, 4, 2, 128>}, {transform_indices = @transform_1, window_bounds = array<i64: 1, 2, 2, 128>}, {transform_indices = @transform_2, window_bounds = array<i64: 1, 2, 128>}, {transform_indices = @transform_3, window_bounds = array<i64: 1, 1, 8, 128>}]} {
    %c0 = arith.constant 0 : index
    %c0_0 = arith.constant 0 : index
    %c0_1 = arith.constant 0 : index
    %0 = vector.load %arg5[%c0, %c0_0, %c0_1] : memref<1x2x128xi32, #tpu.memory_space<vmem>>, vector<1x2x128xi32>
    %1 = vector.shape_cast %0 : vector<1x2x128xi32> to vector<2x128xi32>
    %c0_2 = arith.constant 0 : index
    %c0_3 = arith.constant 0 : index
    %c0_4 = arith.constant 0 : index
    %c0_5 = arith.constant 0 : index
    %2 = vector.load %arg3[%c0_2, %c0_3, %c0_4, %c0_5] : memref<1x4x2x128xf32, #tpu.memory_space<vmem>>, vector<1x1x2x128xf32>
    %3 = vector.shape_cast %2 : vector<1x1x2x128xf32> to vector<2x128xf32>
    %c0_6 = arith.constant 0 : index
    %c1 = arith.constant 1 : index
    %c0_7 = arith.constant 0 : index
    %c0_8 = arith.constant 0 : index
    %4 = vector.load %arg3[%c0_6, %c1, %c0_7, %c0_8] : memref<1x4x2x128xf32, #tpu.memory_space<vmem>>, vector<1x1x2x128xf32>
    %5 = vector.shape_cast %4 : vector<1x1x2x128xf32> to vector<2x128xf32>
    %6 = arith.maximumf %3, %5 : vector<2x128xf32>
    %c0_9 = arith.constant 0 : index
    %c2 = arith.constant 2 : index
    %c0_10 = arith.constant 0 : index
    %c0_11 = arith.constant 0 : index
    %7 = vector.load %arg3[%c0_9, %c2, %c0_10, %c0_11] : memref<1x4x2x128xf32, #tpu.memory_space<vmem>>, vector<1x1x2x128xf32>
    %8 = vector.shape_cast %7 : vector<1x1x2x128xf32> to vector<2x128xf32>
    %9 = arith.maximumf %6, %8 : vector<2x128xf32>
    %c0_12 = arith.constant 0 : index
    %c3 = arith.constant 3 : index
    %c0_13 = arith.constant 0 : index
    %c0_14 = arith.constant 0 : index
    %10 = vector.load %arg3[%c0_12, %c3, %c0_13, %c0_14] : memref<1x4x2x128xf32, #tpu.memory_space<vmem>>, vector<1x1x2x128xf32>
    %11 = vector.shape_cast %10 : vector<1x1x2x128xf32> to vector<2x128xf32>
    %12 = arith.maximumf %9, %11 : vector<2x128xf32>
    %cst = arith.constant 0.000000e+00 : f32
    %13 = vector.broadcast %cst : f32 to vector<2x128xf32>
    %cst_15 = arith.constant -1.000000e+30 : f32
    %14 = vector.broadcast %cst_15 : f32 to vector<2x128xf32>
    %c0_16 = arith.constant 0 : index
    %c0_17 = arith.constant 0 : index
    %c0_18 = arith.constant 0 : index
    %c0_19 = arith.constant 0 : index
    %15 = vector.load %arg3[%c0_16, %c0_17, %c0_18, %c0_19] : memref<1x4x2x128xf32, #tpu.memory_space<vmem>>, vector<1x1x2x128xf32>
    %16 = vector.shape_cast %15 : vector<1x1x2x128xf32> to vector<2x128xf32>
    %17 = arith.subf %16, %12 : vector<2x128xf32>
    %18 = math.exp %17 : vector<2x128xf32>
    %19 = arith.addf %13, %18 : vector<2x128xf32>
    %c0_i32 = arith.constant 0 : i32
    %20 = vector.broadcast %c0_i32 : i32 to vector<2x128xi32>
    %21 = arith.cmpi eq, %1, %20 : vector<2x128xi32>
    %22 = arith.select %21, %16, %14 : vector<2x128xi1>, vector<2x128xf32>
    %c0_20 = arith.constant 0 : index
    %c1_21 = arith.constant 1 : index
    %c0_22 = arith.constant 0 : index
    %c0_23 = arith.constant 0 : index
    %23 = vector.load %arg3[%c0_20, %c1_21, %c0_22, %c0_23] : memref<1x4x2x128xf32, #tpu.memory_space<vmem>>, vector<1x1x2x128xf32>
    %24 = vector.shape_cast %23 : vector<1x1x2x128xf32> to vector<2x128xf32>
    %25 = arith.subf %24, %12 : vector<2x128xf32>
    %26 = math.exp %25 : vector<2x128xf32>
    %27 = arith.addf %19, %26 : vector<2x128xf32>
    %c1_i32 = arith.constant 1 : i32
    %28 = vector.broadcast %c1_i32 : i32 to vector<2x128xi32>
    %29 = arith.cmpi eq, %1, %28 : vector<2x128xi32>
    %30 = arith.select %29, %24, %22 : vector<2x128xi1>, vector<2x128xf32>
    %c0_24 = arith.constant 0 : index
    %c2_25 = arith.constant 2 : index
    %c0_26 = arith.constant 0 : index
    %c0_27 = arith.constant 0 : index
    %31 = vector.load %arg3[%c0_24, %c2_25, %c0_26, %c0_27] : memref<1x4x2x128xf32, #tpu.memory_space<vmem>>, vector<1x1x2x128xf32>
    %32 = vector.shape_cast %31 : vector<1x1x2x128xf32> to vector<2x128xf32>
    %33 = arith.subf %32, %12 : vector<2x128xf32>
    %34 = math.exp %33 : vector<2x128xf32>
    %35 = arith.addf %27, %34 : vector<2x128xf32>
    %c2_i32 = arith.constant 2 : i32
    %36 = vector.broadcast %c2_i32 : i32 to vector<2x128xi32>
    %37 = arith.cmpi eq, %1, %36 : vector<2x128xi32>
    %38 = arith.select %37, %32, %30 : vector<2x128xi1>, vector<2x128xf32>
    %c0_28 = arith.constant 0 : index
    %c3_29 = arith.constant 3 : index
    %c0_30 = arith.constant 0 : index
    %c0_31 = arith.constant 0 : index
    %39 = vector.load %arg3[%c0_28, %c3_29, %c0_30, %c0_31] : memref<1x4x2x128xf32, #tpu.memory_space<vmem>>, vector<1x1x2x128xf32>
    %40 = vector.shape_cast %39 : vector<1x1x2x128xf32> to vector<2x128xf32>
    %41 = arith.subf %40, %12 : vector<2x128xf32>
    %42 = math.exp %41 : vector<2x128xf32>
    %43 = arith.addf %35, %42 : vector<2x128xf32>
    %c3_i32 = arith.constant 3 : i32
    %44 = vector.broadcast %c3_i32 : i32 to vector<2x128xi32>
    %45 = arith.cmpi eq, %1, %44 : vector<2x128xi32>
    %46 = arith.select %45, %40, %38 : vector<2x128xi1>, vector<2x128xf32>
    %c0_32 = arith.constant 0 : index
    %c0_33 = arith.constant 0 : index
    %c0_34 = arith.constant 0 : index
    %c0_35 = arith.constant 0 : index
    %47 = vector.load %arg4[%c0_32, %c0_33, %c0_34, %c0_35] : memref<1x2x2x128xf32, #tpu.memory_space<vmem>>, vector<1x1x2x128xf32>
    %48 = vector.shape_cast %47 : vector<1x1x2x128xf32> to vector<2x128xf32>
    %cst_36 = arith.constant 0.000000e+00 : f32
    %49 = vector.broadcast %cst_36 : f32 to vector<2x128xf32>
    %50 = arith.subf %49, %48 : vector<2x128xf32>
    %51 = math.exp %50 : vector<2x128xf32>
    %cst_37 = arith.constant 1.000000e+00 : f32
    %52 = vector.broadcast %cst_37 : f32 to vector<2x128xf32>
    %53 = arith.addf %52, %51 : vector<2x128xf32>
    %c0_38 = arith.constant 0 : index
    %c1_39 = arith.constant 1 : index
    %c0_40 = arith.constant 0 : index
    %c0_41 = arith.constant 0 : index
    %54 = vector.load %arg4[%c0_38, %c1_39, %c0_40, %c0_41] : memref<1x2x2x128xf32, #tpu.memory_space<vmem>>, vector<1x1x2x128xf32>
    %55 = vector.shape_cast %54 : vector<1x1x2x128xf32> to vector<2x128xf32>
    %cst_42 = arith.constant 0.000000e+00 : f32
    %56 = vector.broadcast %cst_42 : f32 to vector<2x128xf32>
    %57 = arith.subf %56, %55 : vector<2x128xf32>
    %58 = math.exp %57 : vector<2x128xf32>
    %cst_43 = arith.constant 1.000000e+00 : f32
    %59 = vector.broadcast %cst_43 : f32 to vector<2x128xf32>
    %60 = arith.addf %59, %58 : vector<2x128xf32>
    %61 = arith.mulf %18, %60 : vector<2x128xf32>
    %62 = arith.subf %43, %18 : vector<2x128xf32>
    %63 = arith.mulf %62, %53 : vector<2x128xf32>
    %64 = arith.addf %61, %63 : vector<2x128xf32>
    %c0_i32_44 = arith.constant 0 : i32
    %65 = vector.broadcast %c0_i32_44 : i32 to vector<2x128xi32>
    %66 = arith.cmpi eq, %1, %65 : vector<2x128xi32>
    %67 = arith.select %66, %60, %53 : vector<2x128xi1>, vector<2x128xf32>
    %68 = math.log %64 : vector<2x128xf32>
    %69 = math.log %67 : vector<2x128xf32>
    %70 = arith.subf %68, %69 : vector<2x128xf32>
    %71 = arith.subf %46, %12 : vector<2x128xf32>
    %72 = arith.subf %70, %71 : vector<2x128xf32>
    %cst_45 = arith.constant 1.00000008E-7 : f32
    %cst_46 = arith.constant 16.1180954 : f32
    %73 = vector.broadcast %cst_45 : f32 to vector<2x128xf32>
    %74 = arith.maximumf %73, %72 : vector<2x128xf32>
    %75 = vector.broadcast %cst_46 : f32 to vector<2x128xf32>
    %76 = arith.minimumf %75, %74 : vector<2x128xf32>
    %c256_i32 = arith.constant 256 : i32
    %77 = arith.muli %arg1, %c256_i32 : i32
    %78 = tpu.iota {dimensions = array<i32: 0>} : vector<2x128xi32>
    %79 = tpu.iota {dimensions = array<i32: 1>} : vector<2x128xi32>
    %c128_i32 = arith.constant 128 : i32
    %80 = vector.broadcast %c128_i32 : i32 to vector<2x128xi32>
    %81 = arith.muli %78, %80 : vector<2x128xi32>
    %82 = vector.broadcast %77 : i32 to vector<2x128xi32>
    %83 = arith.addi %82, %81 : vector<2x128xi32>
    %84 = arith.addi %83, %79 : vector<2x128xi32>
    %c0_47 = arith.constant 0 : index
    %85 = memref.load %arg2[%c0_47] : memref<1xi32, #tpu.memory_space<smem>>
    %86 = vector.broadcast %85 : i32 to vector<2x128xi32>
    %87 = arith.cmpi slt, %84, %86 : vector<2x128xi32>
    %c255_i32 = arith.constant 255 : i32
    %88 = vector.broadcast %c255_i32 : i32 to vector<2x128xi32>
    %89 = arith.cmpi ne, %1, %88 : vector<2x128xi32>
    %90 = arith.andi %87, %89 : vector<2x128xi1>
    %cst_48 = arith.constant 0.000000e+00 : f32
    %91 = vector.broadcast %cst_48 : f32 to vector<2x128xf32>
    %92 = arith.select %90, %76, %91 : vector<2x128xi1>, vector<2x128xf32>
    %93 = vector.shape_cast %92 : vector<2x128xf32> to vector<1x2x128xf32>
    %cst_49 = arith.constant dense<0.000000e+00> : vector<1xf32>
    %94 = vector.multi_reduction <add>, %93, %cst_49 [1, 2] : vector<1x2x128xf32> to vector<1xf32>
    %95 = vector.shape_cast %94 : vector<1xf32> to vector<1x1x1xf32>
    %96 = vector.extract %95[0, 0, 0] : f32 from vector<1x1x1xf32>
    %cst_50 = arith.constant 1.000000e+00 : f32
    %cst_51 = arith.constant 0.000000e+00 : f32
    %97 = vector.broadcast %cst_50 : f32 to vector<2x128xf32>
    %98 = vector.broadcast %cst_51 : f32 to vector<2x128xf32>
    %99 = arith.select %90, %97, %98 : vector<2x128xi1>, vector<2x128xf32>
    %100 = vector.shape_cast %99 : vector<2x128xf32> to vector<1x2x128xf32>
    %cst_52 = arith.constant dense<0.000000e+00> : vector<1xf32>
    %101 = vector.multi_reduction <add>, %100, %cst_52 [1, 2] : vector<1x2x128xf32> to vector<1xf32>
    %102 = vector.shape_cast %101 : vector<1xf32> to vector<1x1x1xf32>
    %103 = vector.extract %102[0, 0, 0] : f32 from vector<1x1x1xf32>
    %104 = tpu.iota {dimensions = array<i32: 0>} : vector<8x128xi32>
    %105 = tpu.iota {dimensions = array<i32: 1>} : vector<8x128xi32>
    %c0_i32_53 = arith.constant 0 : i32
    %106 = vector.broadcast %c0_i32_53 : i32 to vector<8x128xi32>
    %107 = arith.cmpi eq, %104, %106 : vector<8x128xi32>
    %c0_i32_54 = arith.constant 0 : i32
    %108 = vector.broadcast %c0_i32_54 : i32 to vector<8x128xi32>
    %109 = arith.cmpi eq, %105, %108 : vector<8x128xi32>
    %110 = arith.andi %107, %109 : vector<8x128xi1>
    %cst_55 = arith.constant 0.000000e+00 : f32
    %111 = vector.broadcast %96 : f32 to vector<8x128xf32>
    %112 = vector.broadcast %cst_55 : f32 to vector<8x128xf32>
    %113 = arith.select %110, %111, %112 : vector<8x128xi1>, vector<8x128xf32>
    %c0_i32_56 = arith.constant 0 : i32
    %114 = vector.broadcast %c0_i32_56 : i32 to vector<8x128xi32>
    %115 = arith.cmpi eq, %104, %114 : vector<8x128xi32>
    %c1_i32_57 = arith.constant 1 : i32
    %116 = vector.broadcast %c1_i32_57 : i32 to vector<8x128xi32>
    %117 = arith.cmpi eq, %105, %116 : vector<8x128xi32>
    %118 = arith.andi %115, %117 : vector<8x128xi1>
    %cst_58 = arith.constant 0.000000e+00 : f32
    %119 = vector.broadcast %103 : f32 to vector<8x128xf32>
    %120 = vector.broadcast %cst_58 : f32 to vector<8x128xf32>
    %121 = arith.select %118, %119, %120 : vector<8x128xi1>, vector<8x128xf32>
    %122 = arith.addf %113, %121 : vector<8x128xf32>
    %123 = vector.shape_cast %122 : vector<8x128xf32> to vector<1x1x8x128xf32>
    %c0_59 = arith.constant 0 : index
    %c0_60 = arith.constant 0 : index
    %c0_61 = arith.constant 0 : index
    %c0_62 = arith.constant 0 : index
    %124 = vector.load %arg6[%c0_59, %c0_60, %c0_61, %c0_62] : memref<1x1x8x128xf32, #tpu.memory_space<vmem>>, vector<1x1x8x128xf32>
    tpu.vector_store %arg6[%c0_59, %c0_60, %c0_61, %c0_62], %123 {strides = array<i32>} : memref<1x1x8x128xf32, #tpu.memory_space<vmem>>, vector<1x1x8x128xf32>,
    return
  }
  func.func @transform_0(%arg0: i32, %arg1: i32, %arg2: memref<1xi32, #tpu.memory_space<smem>>) -> (i32, i32, i32, i32) {
    %c0_i32 = arith.constant 0 : i32
    %c0_i32_0 = arith.constant 0 : i32
    %c0_i32_1 = arith.constant 0 : i32
    return %arg0, %c0_i32, %arg1, %c0_i32_0 : i32, i32, i32, i32
  }
  func.func @transform_1(%arg0: i32, %arg1: i32, %arg2: memref<1xi32, #tpu.memory_space<smem>>) -> (i32, i32, i32, i32) {
    %c0_i32 = arith.constant 0 : i32
    %c0_i32_0 = arith.constant 0 : i32
    %c0_i32_1 = arith.constant 0 : i32
    return %arg0, %c0_i32, %arg1, %c0_i32_0 : i32, i32, i32, i32
  }
  func.func @transform_2(%arg0: i32, %arg1: i32, %arg2: memref<1xi32, #tpu.memory_space<smem>>) -> (i32, i32, i32) {
    %c0_i32 = arith.constant 0 : i32
    %c0_i32_0 = arith.constant 0 : i32
    return %arg0, %arg1, %c0_i32 : i32, i32, i32
  }
  func.func @transform_3(%arg0: i32, %arg1: i32, %arg2: memref<1xi32, #tpu.memory_space<smem>>) -> (i32, i32, i32, i32) {
    %c0_i32 = arith.constant 0 : i32
    %c0_i32_0 = arith.constant 0 : i32
    %c0_i32_1 = arith.constant 0 : i32
    return %arg0, %arg1, %c0_i32, %c0_i32_0 : i32, i32, i32, i32
  }
}

</mosaic_0001>

<bundles_post_ra>
// kernel: tpu_custom_call.1
= control target key start
LH: loop header
LB: loop body
LE: loop exit
PB: predicated region body
PF: predicated region fallthrough
CT: control target
= control target key end

     0   :  { %s1043_s0 = inlined_call_operand.<no memory space> [shape: s32[1], index: 0, kind: input, shape index: {}]   ;;  %s1044_s1 = inlined_call_operand.hbm [shape: f32[2,4,2,128], index: 1, kind: input, shape index: {}]   ;;  %s1045_s2 = inlined_call_operand.hbm [shape: f32[2,2,2,128], index: 2, kind: input, shape index: {}]   ;;  %s1046_s3 = inlined_call_operand.hbm [shape: s32[2,2,128], index: 3, kind: input, shape index: {}]   ;;  %s1047_s4 = inlined_call_operand.hbm [shape: f32[2,1,8,128], index: 4, kind: output, shape index: {}]  }
   0x1   :  { %1056 = sst [smem:[#allocation21_spill]] %s1045_s2 }
   0x2   :  { %9 = sst [smem:[#allocation3]] %s1043_s0 }
   0x3   :  { %10 = vsyncpa [#allocation5], 0 }
   0x4   :  { %12 = vsyncpa [#allocation5 + $0x1], 0 }
   0x5   :  { %13 = vsyncpa [#allocation8], 0 }
   0x6   :  { %15 = vsyncpa [#allocation8 + $0x1], 0 }
   0x7   :  { %16 = vsyncpa [#allocation6], 0 }
   0x8   :  { %18 = vsyncpa [#allocation6 + $0x1], 0  ;;  %s877_s17 = smov 0   ;;  %s879_s18 = smov 0  }
   0x9   :  { %s881_s19 = smov 0   ;;  %s883_s20 = smov 0  }
   0xa   :  { %s885_s21 = smov 0   ;;  %s887_s22 = smov 0  }
   0xb LB: > { %1057 = sst [smem:[#allocation14_spill]] %s824_s17  ;;  %s908_s0 = sadd.s32 4294967295, %s844_s22   ;;  %s844_s22 = sphi %s887_s22, %s24_s22   ;;  %s840_s21 = sphi %s885_s21, %s1081_s21   ;;  %s836_s20 = sphi %s883_s20, %s1080_s20   ;;  %s832_s19 = sphi %s881_s19, %s1076_s19   ;;  %s828_s18 = sphi %s879_s18, %s1079_s18   ;;  %s824_s17 = sphi %s877_s17, %s1078_s17  }
   0xc   : > { %1058 = sst [smem:[#allocation15_spill]] %s832_s19  ;;  %s547_s23 = sadd.s32 4294967294, %s844_s22  }
   0xd   : > { %1059 = sst [smem:[#allocation16_spill]] %s844_s22  ;;  %s36_s24 = sadd.s32 1, %s840_s21 }
   0xe   : > { %s45_s25 = sadd.s32 1, %s832_s19  ;;  %p38_p0 = scmp.ge.s32.totalorder %s36_s24, 2 }
   0xf   : > { %p52_p1 = scmp.ne.s32.totalorder %s832_s19, %s828_s18  ;;  %p53_p2 = scmp.eq.s32.totalorder %s844_s22, 0 }
  0x10   : > { %p58_p3 = scmp.ne.s32.totalorder %s828_s18, %s824_s17  ;;  %s1083_s24 = smov (%p38_p0, %s36_s24), 0 }
  0x11   : > { %1060 = sst [smem:[#allocation17_spill]] %s1083_s24  ;;  %p920_p4 = por %p53_p2, %p52_p1 }
  0x12   : > { %p59_p5 = scmp.eq.s32.totalorder %s908_s0, 0  ;;  %s40_s27 = ssub.s32 %s840_s21, %s1083_s24 }
  0x13   : > { %p140_p6 = scmp.eq.s32.totalorder %s908_s0, 1  ;;  %p43_p7 = scmp.eq.s32.totalorder %s40_s27, 0 }
  0x14   : > { %p928_p8 = por %p59_p5, %p58_p3  ;;  %p146_p10 = scmp.eq.s32.totalorder %s547_s23, 1 }
  0x15   : > { %p932_p9 = por %p140_p6, %p52_p1  ;;  %p549_p12 = scmp.ge.s32.totalorder %s844_s22, 2 }
  0x16   : > { %s937_s30 = scalar_select %p43_p7, %s832_s19, %s45_s25  }
  0x17   : > { %s1063_s29 = scalar_select %p932_p9, 1, 0 }
  0x18   : > { %1065 = sst [smem:[#allocation19_spill]] %s937_s30  ;;  %p939_p11 = por %p146_p10, %p58_p3 }
  0x19   : > { %1064 = sst [smem:[#allocation18_spill]] %s1063_s29  ;;  %p599_p13 = scmp.lt.s32.totalorder %s844_s22, 2 }
  0x1a   : > { %s1066_s5 = scalar_select %p939_p11, 1, 0 }
  0x1b   : > { %s946_s6 = sand.u32 1, %s832_s19   ;;  %p950_p0 = pnand %p599_p13, %p920_p4 }
  0x1c   : > { %1067 = sst [smem:[#allocation20_spill]] %s1066_s5  ;;  %s189_s8 = sand.u32 1, %s844_s22  }
  0x1d   : > { %s553_s9 = sshll.u32 %s946_s6, 2  ;;  %s572_s10 = sshll.u32 %s840_s21, 2 }
  0x1e   : > { %s193_s11 = scalar_lea.vmem [#allocation7], %s553_s9  ;;  %s1069_s2 = sld [smem:[#allocation21_spill]] }
  0x1f   : > { %s202_s12 = sshll.u32 %s193_s11, 4  ;;  %p558_p1 = scmp.ge.s32.totalorder %s844_s22, 1  ;;  %s203_s12 = int_to_ptr.vmem [resolvable:$true] %s202_s12 }
  0x20   : > { %p230_p2 = scmp.lt.s32.totalorder %s844_s22, 3  ;;  %s190_s23 = scalar_lea.sflag [#allocation8], %s189_s8 }
  0x21   : > { %s846_s25 = smov 32   ;;  %s847_s26 = smov 2  }
  0x22   : > { %p964_p3 = pnand %p558_p1, %p230_p2  ;;  %s550_s9 = sshll.u32 %s946_s6, 3 }
  0x23   : > { %s167_s8 = scalar_lea.sflag [#allocation5], %s946_s6 }
  0x24   : > { %s199_s15 = scalar_lea.hbm %s1069_s2, %s572_s10  ;;  %s571_s10 = sshll.u32 %s840_s21, 3 }
  0x25   : > { %s200_s16 = sshll.u32 %s199_s15, 4  ;;  %s176_s14 = scalar_lea.hbm %s1044_s1, %s571_s10  ;;  %s201_s16 = int_to_ptr.hbm [resolvable:$true] %s200_s16 }
  0x26   : > { %591 = dma.hbm_to_vmem [thread:$0]  (!%p950_p0), %s201_s16, 64, %s203_s12, %s190_s23, %s846_s25, %s846_s25, %s847_s26  }
  0x27   : > { %s177_s15 = sshll.u32 %s176_s14, 4  ;;  %s170_s2 = scalar_lea.vmem [#allocation4], %s550_s9  ;;  %s178_s15 = int_to_ptr.hbm [resolvable:$true] %s177_s15 }
  0x28   : > { %s179_s24 = sshll.u32 %s170_s2, 4  ;;  %s556_s12 = sshll.u32 %s946_s6, 1  ;;  %s180_s24 = int_to_ptr.vmem [resolvable:$true] %s179_s24 }
  0x29   : > { %588 = dma.hbm_to_vmem [thread:$0]  (!%p950_p0), %s178_s15, 128, %s180_s24, %s167_s8, %s846_s25, %s846_s25, %s847_s26  }
  0x2a   : > { %s557_s16 = sshll.u32 %s840_s21, 1  ;;  %s216_s17 = scalar_lea.vmem [#allocation9], %s556_s12 }
  0x2b   : > { %s221_s22 = scalar_lea.hbm %s1046_s3, %s557_s16  ;;  %s225_s29 = sshll.u32 %s216_s17, 4  ;;  %s226_s29 = int_to_ptr.vmem [resolvable:$true] %s225_s29 }
  0x2c   : > { %s223_s5 = sshll.u32 %s221_s22, 4  ;;  %234 = sbr.rel (%p964_p3) target bundleno = 296 (0x128), region = 32  ;;  %s224_s5 = int_to_ptr.hbm [resolvable:$true] %s223_s5 }
  0x2d   : > { %594 = dma.hbm_to_vmem [thread:$0]  (!%p950_p0), %s224_s5, 32, %s226_s29, %s190_s23  }
  0x2e   : > { %s986_s2 = sand.u32 (!%p964_p3), 1, %s828_s18  }
  0x2f   : > { %s559_s24 = sshll.u32 (!%p964_p3), %s986_s2, 3  ;;  %s237_s19 = scalar_lea.sflag (!%p964_p3), [#allocation5], %s986_s2 }
  0x30   : > { %s240_s22 = scalar_lea.vmem (!%p964_p3), [#allocation4], %s559_s24 }
  0x31   : > { %811 = dma.done.wait (%p928_p8), %s237_s19, 128  }
  0x32   : > { %813 = vsyncadd (%p928_p8), %s237_s19, 4294967168  ;;  %s246_s17 = sand.u32 1, %s908_s0   ;;  %s560_s29 = sshll.u32 %s986_s2, 2 }
  0x33   : > { %s247_s30 = scalar_lea.sflag [#allocation8], %s246_s17  ;;  %s250_s5 = scalar_lea.vmem [#allocation7], %s560_s29 }
  0x34   : > { %815 = dma.done.wait (%p928_p8), %s247_s30, 96  }
  0x35   : > { %817 = vsyncadd (%p928_p8), %s247_s30, 4294967200  ;;  %v295_v0 = vld [vmem:[%s240_s22] sm:$0x3]  ;;  %v563_v1 = vld [vmem:[%s240_s22 + $0x2] sm:$0x3]  ;;  %s561_s0 = sshll.u32 %s986_s2, 1  ;;  %v355_v37 = vlaneseq }
  0x36   : > { %v298_v2 = vmax.f32 %v295_v0, %v563_v1  ;;  %v564_v3 = vld [vmem:[%s240_s22 + $0x4] sm:$0x3]  ;;  %v565_v4 = vld [vmem:[%s240_s22 + $0x6] sm:$0x3]  ;;  %v329_v5 = vld [vmem:[%s250_s5] sm:$0x3] }
  0x37   : > { %v330_v7 = vsub.f32 0.0, %v329_v5  ;;  %v566_v8 = vld [vmem:[%s250_s5 + $0x2] sm:$0x3]  ;;  %s260_s28 = scalar_lea.vmem [#allocation9], %s561_s0  ;;  %v356_v41 = vshrl.u32 %v355_v37, 7  ;;  %s363_s6 = sld [smem:[#allocation3]] }
  0x38   : > { %v301_v6 = vmax.f32 %v298_v2, %v564_v3  ;;  %v336_v9 = vsub.f32 0.0, %v566_v8  ;;  %v294_v25 = vld [vmem:[%s260_s28] sm:$0x3]  ;;  %v358_v44 = vand.u32 127, %v355_v37  ;;  %vm369_vm7 = vcmask 1041408   ;;  %s568_s7 = sshll.u32 %s836_s20, 3 }
  0x39   : > { %v331_v11 = vmul.f32 1.442695, %v330_v7  ;;  %vm309_vm0 = vcmp.eq.s32.totalorder %v294_v25, 0  ;;  %vm315_vm1 = vcmp.eq.s32.totalorder %v294_v25, 1  ;;  %vm321_vm2 = vcmp.eq.s32.totalorder %v294_v25, 2  ;;  %s414_s27 = scalar_lea.hbm %s1047_s4, %s568_s7  ;;  %s293_s9 = scalar_lea.vmem [#allocation10], %s559_s24 }
  0x3a   : > { %v304_v10 = vmax.f32 %v301_v6, %v565_v4  ;;  %v337_v12 = vmul.f32 1.442695, %v336_v9  ;;  %v310_v36 = vsel %vm309_vm0, %v295_v0, -1e+30  ;;  %vm327_vm3 = vcmp.eq.s32.totalorder %v294_v25, 3  ;;  %s416_s11 = sshll.u32 %s293_s9, 4  ;;  %s417_s11 = int_to_ptr.vmem [resolvable:$true] %s416_s11 }
  0x3b   : > { %652 = vpow2.f32 %v331_v11  ;;  %v316_v39 = vsel %vm315_vm1, %v563_v1, %v310_v36  ;;  %v359_v45 = vmul.u32 128, %v356_v41  ;;  %vm366_vm5 = vcmp.ne.s32.totalorder %v294_v25, 255  ;;  %s418_s14 = sshll.u32 %s414_s27, 4  ;;  %s403_s20 = scalar_lea.sflag [#allocation6], %s986_s2  ;;  %s419_s14 = int_to_ptr.hbm [resolvable:$true] %s418_s14 }
  0x3c   : > { %v305_v13 = vsub.f32 %v295_v0, %v304_v10  ;;  %v311_v14 = vsub.f32 %v563_v1, %v304_v10  ;;  %v317_v15 = vsub.f32 %v564_v3, %v304_v10  ;;  %v323_v16 = vsub.f32 %v565_v4, %v304_v10  ;;  %s772_s15 = sshra.s32 %s419_s14, 4  ;;  %s778_s24 = scalar_lea.hbm %s1047_s4, 16  ;;  %s773_s15 = int_to_ptr.hbm [resolvable:$true] %s772_s15 }
  0x3d   : > { %654 = vpow2.f32 %v337_v12  ;;  %v322_v42 = vsel %vm321_vm2, %v564_v3, %v316_v39  ;;  %v362_v51 = vadd.s32 %v359_v45, %v358_v44  ;;  %v364_v52 = vstv %s363_s6  ;;  %s774_s8 = scalar_lea.hbm %s773_s15, 8  ;;  %p779_p7 = scmp.lt.s32.totalorder %s773_s15, %s1047_s4 }
  0x3e   : > { %v306_v17 = vmul.f32 1.442695, %v305_v13  ;;  %v312_v18 = vmul.f32 1.442695, %v311_v14  ;;  %v318_v19 = vmul.f32 1.442695, %v317_v15  ;;  %v328_v46 = vsel %vm327_vm3, %v565_v4, %v322_v42  ;;  %p775_p4 = scmp.ne.s32.totalorder %s773_s15, %s774_s8  ;;  %p780_p8 = scmp.lt.s32.totalorder %s778_s24, %s774_s8 }
  0x3f   : > { %v324_v20 = vmul.f32 1.442695, %v323_v16  ;;  %v350_v50 = vsub.f32 %v328_v46, %v304_v10  ;;  %vm365_vm4 = vcmp.lt.s32.totalorder %v362_v51, %v364_v52  ;;  %v848_v59 = vmov 0.0  }
  0x40   : > { %656 = vpow2.f32 %v306_v17  ;;  %vm367_vm6 = vmand %vm365_vm4, %vm366_vm5  ;;  %vm391_vm8 = vcmp.eq.s32.totalorder %v356_v41, 0  ;;  %vm392_vm9 = vcmp.eq.s32.totalorder %v358_v44, 0  ;;  %vm396_vm10 = vcmp.eq.s32.totalorder %v358_v44, 1  ;;  %p776_p5 = pnand %p775_p4, %p932_p9  ;;  %p781_p10 = por %p780_p8, %p779_p7 }
  0x41   : > { %658 = vpow2.f32 %v312_v18  ;;  %v653_v21 = vpop.eup %652  ;;  %v380_v60 = vsel %vm367_vm6, 1.0, %v848_v59  ;;  %vm393_vm11 = vmand %vm391_vm8, %vm392_vm9 }
  0x42   : > { %660 = vpow2.f32 %v318_v19  ;;  %v333_v31 = vadd.f32 1.0, %v653_v21  ;;  %v381_v61 = vsel %vm369_vm7, %v380_v60, 0.0  ;;  %vm397_vm12 = vmand %vm391_vm8, %vm396_vm10  ;;  %p777_p6 = pneg %p776_p5 }
  0x43   : > { %662 = vpow2.f32 %v324_v20  ;;  %v655_v22 = vpop.eup %654 }
  0x44   : > { %v339_v30 = vadd.f32 1.0, %v655_v22  ;;  %p782_p13 = pnand %p781_p10, %p777_p6 }
  0x46   : > { %v657_v23 = vpop.eup %656  ;;  %v344_v33 = vsel %vm309_vm0, %v339_v30, %v333_v31 }
  0x47   : > { %v659_v24 = vpop.eup %658  ;;  %v340_v34 = vmul.f32 %v657_v23, %v339_v30  ;;  %664 = vlog2.f32 %v344_v33 }
  0x48   : > { %v661_v26 = vpop.eup %660  ;;  %v314_v27 = vadd.f32 %v659_v24, %v657_v23 }
  0x49   : > { %v663_v28 = vpop.eup %662 }
  0x4a   : > { %v320_v29 = vadd.f32 %v661_v26, %v314_v27 }
  0x4c   : > { %v326_v32 = vadd.f32 %v663_v28, %v320_v29 }
  0x4d   : > { %v665_v43 = vpop.eup %664 }
  0x4e   : > { %v341_v35 = vsub.f32 %v326_v32, %v657_v23  ;;  %v348_v47 = vmul.f32 0.6931472, %v665_v43 }
  0x50   : > { %v342_v38 = vmul.f32 %v341_v35, %v333_v31 }
  0x52   : > { %v343_v40 = vadd.f32 %v342_v38, %v340_v34 }
  0x54   : > { %666 = vlog2.f32 %v343_v40 }
  0x5a   : > { %v667_v48 = vpop.eup %666 }
  0x5b   : > { %v346_v49 = vmul.f32 0.6931472, %v667_v48 }
  0x5d   : > { %v349_v53 = vsub.f32 %v346_v49, %v348_v47 }
  0x5f   : > { %v351_v54 = vsub.f32 %v349_v53, %v350_v50 }
  0x61   : > { %v352_v55 = vmax.f32 %v351_v54, 1.0000001e-07 }
  0x63   : > { %v353_v56 = vmin.f32 %v352_v55, 16.118095 }
  0x65   : > { %v368_v57 = vsel %vm367_vm6, %v353_v56, 0.0 }
  0x66   : > { %v370_v58 = vsel %vm369_vm7, %v368_v57, 0.0 }
  0x67   : > { %371 = vadd.xlane.f32.xlu0 %v370_v58 }
  0x6f   : > { %382 = vadd.xlane.f32.xlu0 %v381_v61 }
  0xda   : > { %v372_v62 = vpop.xlane.xlu0 %371 }
  0xdb   : > { %v373_v63 = vrot.slane %v372_v62, 4 }
  0xdd   : > { %v374_v0 = vadd.f32 %v373_v63, %v372_v62 }
  0xdf   : > { %v375_v1 = vrot.slane %v374_v0, 2 }
  0xe1   : > { %v376_v2 = vadd.f32 %v375_v1, %v374_v0 }
  0xe2   : > { %v383_v3 = vpop.xlane.xlu0 %382 }
  0xe3   : > { %v384_v4 = vrot.slane %v383_v3, 4  ;;  %v377_v5 = vrot.slane %v376_v2, 1 }
  0xe5   : > { %v385_v6 = vadd.f32 %v384_v4, %v383_v3  ;;  %v378_v7 = vadd.f32 %v377_v5, %v376_v2 }
  0xe7   : > { %v386_v8 = vrot.slane %v385_v6, 2  ;;  %573 = vpush %v378_v7 }
  0xe9   : > { %v387_v9 = vadd.f32 %v386_v8, %v385_v6 }
  0xeb   : > { %v388_v10 = vrot.slane %v387_v9, 1 }
  0xed   : > { %v389_v11 = vadd.f32 %v388_v10, %v387_v9 }
  0xef   : > { %575 = vpush %v389_v11 }
 0x118   : > { %s574_s23 = spop %573 }
 0x119   : > { %v394_v12 = vstv %s574_s23 }
 0x11a   : > { %v395_v14 = vsel %vm393_vm11, %v394_v12, 0.0 }
 0x120   : > { %s576_s13 = spop %575 }
 0x121   : > { %v398_v13 = vstv %s576_s13 }
 0x122   : > { %v399_v15 = vsel %vm397_vm12, %v398_v13, 0.0 }
 0x123   : > { %v400_v16 = vadd.f32 %v399_v15, %v395_v14 }
 0x125   : > { %401 = vst [vmem:[%s293_s9] sm:$0xff] %v400_v16 }
 0x126   : > { %785 = shalt.err (!%p782_p13)
}
 0x127   : > { %583 = dma.vmem_to_hbm [thread:$0]  (%p932_p9), %s417_s11, 128, %s419_s14, %s403_s20  }
 0x128 PF: > { %s1072_s2 = sld [smem:[#allocation14_spill]]  ;;  %p596_p0 = pnand %p549_p12, %p939_p11 }
 0x129   : > { %s1074_s29 = sld [smem:[#allocation16_spill]] }
 0x12a   : > { %p597_p1 = pneg %p596_p0 }
 0x12e   : > { %s430_s30 = sand.u32 1, %s1072_s2  }
 0x12f   : > { %s431_s5 = scalar_lea.sflag [#allocation6], %s430_s30 }
 0x130   : > { %819 = dma.done.wait (%p597_p1), %s431_s5, 128  }
 0x131   : > { %821 = vsyncadd (%p597_p1), %s431_s5, 4294967168  ;;  %s24_s22 = sadd.s32 1, %s1074_s29   ;;  %s1075_s0 = sld [smem:[#allocation15_spill]] }
 0x132   : > { %p21_p2 = scmp.ge.s32.totalorder %s24_s22, 4   ;;  %s1076_s19 = sld [smem:[#allocation19_spill]] }
 0x133   : > { %s1077_s28 = sld [smem:[#allocation17_spill]]  ;;  %s1078_s17 = smov %s828_s18 }
 0x134   : > { %s1080_s20 = smov %s840_s21 }
 0x135   :  { %23 = sbr.rel (!%p21_p2) target bundleno = 11 (0xb), region = 105 }
 0x137   : > { %s1079_s18 = smov %s1075_s0 }
 0x139   : > { %s1081_s21 = smov %s1077_s28 }
 0x13a   :  { %437 = vsyncpa [#allocation5], 1 }
 0x13b   :  { %439 = vsyncpa [#allocation5 + $0x1], 1 }
 0x13c   :  { %440 = vsyncpa [#allocation8], 1 }
 0x13d   :  { %442 = vsyncpa [#allocation8 + $0x1], 1 }
 0x13e   :  { %443 = vsyncpa [#allocation6], 1 }
 0x13f   :  { %445 = vsyncpa [#allocation6 + $0x1], 1 }

</bundles_post_ra>
